<compile_context>
chip_gen: v6e
topology: v6e:2x2x1
jax: 0.10.0
libtpu: 0.0.40
codegen_flags: <defaults>
</compile_context>

<pallas_src>
import functools

import jax
import jax.numpy as jnp
from jax.experimental import pallas as pl
from jax.experimental.pallas import tpu as pltpu


# --------------------------------------------------------------------------
# Kernel: one MXU matmul + lane-dense store.
# --------------------------------------------------------------------------
def s4_matmul_kernel(x_ref, w_ref, y_ref):
    """x:(bm, L*p)  w:(L*p, p_pad)  y:(bm, p_pad)."""
    y_ref[...] = jnp.dot(
        x_ref[...], w_ref[...], preferred_element_type=jnp.float32
    ).astype(y_ref.dtype)


# --------------------------------------------------------------------------
# Wrapper-side precompute: fold C1 @ A1^(L-1-i) @ B1 into one (L*p, p_pad)
# projection matrix.  L tiny 3x3 matrix powers -> done once, outside the
# kernel (cacheable per parameter set / per L).
# --------------------------------------------------------------------------
def make_projection(A1, B1, C1, L, lane=128):
    A1 = A1.astype(jnp.float32)
    B1 = B1.astype(jnp.float32)
    C1 = C1.astype(jnp.float32)
    N = A1.shape[0]
    p = B1.shape[1]

    blocks = [None] * L
    Ak = jnp.eye(N, dtype=jnp.float32)            # A1^(L-1-i), built in reverse
    for i in range(L - 1, -1, -1):
        Mi = C1 @ Ak @ B1                         # (p, p): y-contribution of x[i]
        blocks[i] = Mi.T                          # y[o] = sum_j Mi[o, j] x[i, j]
        Ak = A1 @ Ak
    W = jnp.concatenate(blocks, axis=0)           # (L*p, p)

    # Pad output columns to a multiple of 128 -> unmasked full-width store.
    p_pad = pl.cdiv(p, lane) * lane
    if p_pad != p:
        W = jnp.pad(W, ((0, 0), (0, p_pad - p)))
    return W                                       # (L*p, p_pad)


# --------------------------------------------------------------------------
# Batched forward: xs (B, L, p) -> (B, p).  One pallas_call for all sequences.
# --------------------------------------------------------------------------
def s4_recurrent_forward_batched(xs, A1, B1, C1, *, block_b=256):
    B, L, p = xs.shape
    W = make_projection(A1, B1, C1, L)             # (K, p_pad)
    K, p_pad = W.shape

    xf = xs.reshape(B, K).astype(jnp.float32)

    # Tile the batch axis (>=256 rows per MXU pass when B is large); pad B up
    # to a multiple of the tile so blocks divide evenly.
    bm = min(block_b, B)
    Bp = pl.cdiv(B, bm) * bm
    if Bp != B:
        xf = jnp.pad(xf, ((0, Bp - B), (0, 0)))
    grid = (Bp // bm,)

    y = pl.pallas_call(
        s4_matmul_kernel,
        out_shape=jax.ShapeDtypeStruct((Bp, p_pad), jnp.float32),
        grid=grid,
        in_specs=[
            pl.BlockSpec((bm, K), lambda b: (b, 0)),
            pl.BlockSpec((K, p_pad), lambda b: (0, 0)),
        ],
        out_specs=pl.BlockSpec((bm, p_pad), lambda b: (b, 0)),
        compiler_params=pltpu.CompilerParams(
            dimension_semantics=("parallel",)      # shards batch across TCs on v7x
        ),
    )(xf, W)

    return y[:B, :p]


# --------------------------------------------------------------------------
# Single-sequence forward matching the torch module: x (L, p) -> y (p,).
# --------------------------------------------------------------------------
def s4_recurrent_forward(x, A1, B1, C1):
    return s4_recurrent_forward_batched(x[None], A1, B1, C1)[0]


# --------------------------------------------------------------------------
# Deterministic re-implementation of S4Recurrent.__init__ parameter math.
# --------------------------------------------------------------------------
def make_params(key, N=3, p=64, delta=1.0):
    k1, k2, k3, k4, k5 = jax.random.split(key, 5)
    Lambda = jax.random.normal(k1, (N, N), dtype=jnp.float32)
    r = 1
    P = jax.random.normal(k2, (N, r), dtype=jnp.float32)
    Q = jax.random.normal(k3, (N, r), dtype=jnp.float32)
    B = jax.random.normal(k4, (N, p), dtype=jnp.float32)
    C = jax.random.normal(k5, (p, N), dtype=jnp.float32)

    I = jnp.eye(N, dtype=jnp.float32)
    A_0 = (2.0 / delta) * I + (Lambda - P @ Q.T)
    # Matches torch exactly: (2/delta - Lambda) is scalar-minus-matrix
    # elementwise, then a matrix inverse of that.
    Dm = jnp.linalg.inv(2.0 / delta - Lambda)
    Ir = jnp.eye(r, dtype=jnp.float32)
    A_1 = Dm - Dm @ P @ jnp.linalg.inv(Ir + Q.T @ Dm @ P) @ Q.T @ Dm

    A1 = A_1 @ A_0          # (N, N)
    B1 = 2.0 * (A_1 @ B)    # (N, p)
    C1 = C                  # (p, N)
    return A1, B1, C1


# --------------------------------------------------------------------------
# Pure-JAX reference mirroring the torch loop (serial recurrence).
# --------------------------------------------------------------------------
def reference_forward(x, A1, B1, C1):
    N = A1.shape[0]
    h = jnp.zeros((N,), dtype=jnp.float32)
    for i in range(x.shape[0]):
        h = A1 @ h + B1 @ x[i]
    return C1 @ h


def _assert_close(got, want, name):
    scale = float(jnp.max(jnp.abs(want))) + 1e-6
    assert bool(jnp.all(jnp.isfinite(got))), f"{name}: non-finite output"
    assert jnp.allclose(got, want, rtol=2e-3, atol=2e-4 * scale), (name, got, want)


if __name__ == "__main__":
    N, p, delta = 3, 64, 1.0
    L = 8          # sequence length
    Bsz = 8        # batch of sequences for the batched variant

    key = jax.random.PRNGKey(0)
    kparams, kx, kxs = jax.random.split(key, 3)

    A1, B1, C1 = make_params(kparams, N=N, p=p, delta=delta)

    # Single sequence (matches the torch module's forward signature).
    x = jax.random.normal(kx, (L, p), dtype=jnp.float32)
    y = s4_recurrent_forward(x, A1, B1, C1)
    y = jax.block_until_ready(y)
    assert y.shape == (p,), y.shape
    _assert_close(y, reference_forward(x, A1, B1, C1), "single")

    # Batched: many sequences, one pallas_call (amortizes launch/DMA setup).
    xs = jax.random.normal(kxs, (Bsz, L, p), dtype=jnp.float32)
    ys = s4_recurrent_forward_batched(xs, A1, B1, C1)
    ys = jax.block_until_ready(ys)
    assert ys.shape == (Bsz, p), ys.shape
    for b in range(Bsz):
        _assert_close(ys[b], reference_forward(xs[b], A1, B1, C1), f"batch[{b}]")

    print("KERNEL_OK")
</pallas_src>

<mosaic_0001>
module attributes {stable_mosaic.version = 11 : i64} {
  func.func @s4_matmul_kernel(%arg0: i32, %arg1: memref<1x512xf32, #tpu.memory_space<vmem>>, %arg2: memref<512x128xf32, #tpu.memory_space<vmem>>, %arg3: memref<1x128xf32, #tpu.memory_space<vmem>>) attributes {dimension_semantics = [#tpu.dimension_semantics<parallel>], iteration_bounds = array<i64: 1>, scalar_prefetch = 0 : i64, scratch_operands = 0 : i64, tpu.core_type = #tpu.core_type<tc>, window_params = [{transform_indices = @transform_0, window_bounds = array<i64: 1, 512>}, {pipeline_mode = #tpu.pipeline_mode<synchronous>, transform_indices = @transform_1, window_bounds = array<i64: 512, 128>}, {transform_indices = @transform_2, window_bounds = array<i64: 1, 128>}]} {
    %c0 = arith.constant 0 : index
    %c0_0 = arith.constant 0 : index
    %0 = vector.load %arg1[%c0, %c0_0] : memref<1x512xf32, #tpu.memory_space<vmem>>, vector<1x512xf32>
    %c0_1 = arith.constant 0 : index
    %c0_2 = arith.constant 0 : index
    %1 = vector.load %arg2[%c0_1, %c0_2] : memref<512x128xf32, #tpu.memory_space<vmem>>, vector<512x128xf32>
    %cst = arith.constant dense<0.000000e+00> : vector<1x128xf32>
    %2 = tpu.matmul %0, %1, %cst {dimension_numbers = #tpu.dot_dimension_numbers<[1], [0], [0], [1], [0, 0, 1, 1], [], []>} : vector<1x512xf32>, vector<512x128xf32>, vector<1x128xf32> -> vector<1x128xf32>
    %c0_3 = arith.constant 0 : index
    %c0_4 = arith.constant 0 : index
    %3 = vector.load %arg3[%c0_3, %c0_4] : memref<1x128xf32, #tpu.memory_space<vmem>>, vector<1x128xf32>
    tpu.vector_store %arg3[%c0_3, %c0_4], %2 {strides = array<i32>} : memref<1x128xf32, #tpu.memory_space<vmem>>, vector<1x128xf32>,
    return
  }
  func.func @transform_0(%arg0: i32) -> (i32, i32) {
    %c0_i32 = arith.constant 0 : i32
    %c0_i32_0 = arith.constant 0 : i32
    return %arg0, %c0_i32 : i32, i32
  }
  func.func @transform_1(%arg0: i32) -> (i32, i32) {
    %c0_i32 = arith.constant 0 : i32
    %c0_i32_0 = arith.constant 0 : i32
    %c0_i32_1 = arith.constant 0 : i32
    return %c0_i32, %c0_i32_0 : i32, i32
  }
  func.func @transform_2(%arg0: i32) -> (i32, i32) {
    %c0_i32 = arith.constant 0 : i32
    %c0_i32_0 = arith.constant 0 : i32
    return %arg0, %c0_i32 : i32, i32
  }
}

</mosaic_0001>

<bundles_post_ra>
// kernel: tpu_custom_call.1
= control target key start
LH: loop header
LB: loop body
LE: loop exit
PB: predicated region body
PF: predicated region fallthrough
CT: control target
= control target key end

     0   :  { %7 = vsyncpa [#allocation3], 0  ;;  %s451_s0 = inlined_call_operand.hbm [shape: f32[1,512], index: 0, kind: input, shape index: {}]   ;;  %s452_s1 = inlined_call_operand.hbm [shape: f32[512,128], index: 1, kind: input, shape index: {}]   ;;  %s453_s2 = inlined_call_operand.hbm [shape: f32[1,128], index: 2, kind: output, shape index: {}]  }
   0x1   :  { %8 = vsyncpa [#allocation6], 0 }
   0x2   :  { %9 = vsyncpa [#allocation4], 0  ;;  %s422_s9 = smov [#allocation2]   ;;  %s423_s11 = smov [#allocation5]  }
   0x3   :  { %s16_s10 = sshll.u32 %s422_s9, 4  ;;  %s25_s12 = sshll.u32 %s423_s11, 4  ;;  %s17_s10 = int_to_ptr.vmem [resolvable:$true] %s16_s10  ;;  %s26_s12 = int_to_ptr.vmem [resolvable:$true] %s25_s12 }
   0x4   :  { %s364_s13 = scalar_lea.vmem %s17_s10, 64  ;;  %p369_p1 = scmp.lt.s32.totalorder %s17_s10, %s17_s10 }
   0x5   :  { %p365_p0 = scmp.ne.s32.totalorder %s17_s10, %s364_s13  ;;  %p370_p2 = scmp.lt.s32.totalorder %s364_s13, %s364_s13 }
   0x7   :  { %p371_p3 = por %p370_p2, %p369_p1 }
   0x9   :  { %p372_p4 = pnand %p371_p3, %p365_p0 }
   0xb   :  { %375 = shalt.err (!%p372_p4)
}
   0xc   :  { %19 = dma.hbm_to_vmem [thread:$0]  %s451_s0, 64, %s17_s10, [#allocation3]  }
   0xd   :  { %s384_s16 = scalar_lea.vmem %s26_s12, 8192  ;;  %p389_p6 = scmp.lt.s32.totalorder %s26_s12, %s26_s12 }
   0xe   :  { %p385_p5 = scmp.ne.s32.totalorder %s26_s12, %s384_s16  ;;  %p390_p7 = scmp.lt.s32.totalorder %s384_s16, %s384_s16 }
  0x10   :  { %p391_p8 = por %p390_p7, %p389_p6 }
  0x12   :  { %p392_p9 = pnand %p391_p8, %p385_p5 }
  0x14   :  { %395 = shalt.err (!%p392_p9)
}
  0x15   :  { %s424_s17 = smov 128   ;;  %s425_s18 = smov 8  }
  0x16   :  { %31 = dma.hbm_to_vmem [thread:$0]  %s452_s1, 8192, %s26_s12, [#allocation6], %s424_s17, %s424_s17, %s425_s18  }
  0x17   :  { %416 = dma.done.wait [#allocation3], 64  }
  0x18   :  { %417 = vsyncadd [#allocation3], 4294967232 }
  0x19   :  { %418 = dma.done.wait [#allocation6], 8192  }
  0x1a   :  { %419 = vsyncadd [#allocation6], 4294959104  ;;  %v70_v0 = vld [vmem:[#allocation5 + $0xf8] sm:$0xff]  ;;  %v69_v4 = vld [vmem:[#allocation5 + $0xf0] sm:$0xff]  ;;  %v104_v38 = vlaneseq  ;;  %s426_s0 = smov [#allocation7]  }
  0x1b   :  { %v102_v1 = vld [vmem:[#allocation5 + $0x1f8] sm:$0xff]  ;;  %281 = vmatprep.subr.mxu0 %v70_v0  ;;  %v101_v5 = vld [vmem:[#allocation5 + $0x1f0] sm:$0xff]  ;;  %v68_v8 = vld [vmem:[#allocation5 + $0xe8] sm:$0xff]  ;;  %s271_s1 = sshll.u32 %s426_s0, 4  ;;  %s272_s1 = int_to_ptr.vmem [resolvable:$true] %s271_s1 }
  0x1c   :  { %v54_v2 = vld [vmem:[#allocation5 + $0x78] sm:$0xff]  ;;  %316 = vmatprep.subr.mxu1 %v102_v1  ;;  %v53_v6 = vld [vmem:[#allocation5 + $0x70] sm:$0xff]  ;;  %v100_v9 = vld [vmem:[#allocation5 + $0x1e8] sm:$0xff]  ;;  %v105_v47 = vshrl.u32 %v104_v38, 7  ;;  %s396_s21 = scalar_lea.vmem %s272_s1, 16  ;;  %s400_s22 = scalar_lea.vmem %s272_s1, 32 }
  0x1d   :  { %v86_v3 = vld [vmem:[#allocation5 + $0x178] sm:$0xff]  ;;  %282 = vmatpush3.msra.mxu0 %v54_v2  ;;  %v85_v7 = vld [vmem:[#allocation5 + $0x170] sm:$0xff]  ;;  %v52_v10 = vld [vmem:[#allocation5 + $0x68] sm:$0xff]  ;;  %p397_p10 = scmp.ne.s32.totalorder %s272_s1, %s396_s21  ;;  %p401_p11 = scmp.lt.s32.totalorder %s272_s1, %s272_s1 }
  0x1e   :  { %317 = vmatpush3.msra.mxu1 %v86_v3  ;;  %283 = vmatprep.subr.mxu0 %v69_v4  ;;  %v84_v11 = vld [vmem:[#allocation5 + $0x168] sm:$0xff]  ;;  %v67_v12 = vld [vmem:[#allocation5 + $0xe0] sm:$0xff]  ;;  %v66_v16 = vld [vmem:[#allocation5 + $0xd8] sm:$0xff]  ;;  %v110_v56 = vsub.s32 1, %v105_v47  ;;  %v118_v60 = vsub.s32 3, %v105_v47  ;;  %v106_v63 = vsub.s32 0, %v105_v47  ;;  %p402_p12 = scmp.lt.s32.totalorder %s400_s22, %s396_s21 }
  0x1f   :  { %318 = vmatprep.subr.mxu1 %v101_v5  ;;  %284 = vmatpush3.msra.mxu0 %v53_v6  ;;  %v99_v13 = vld [vmem:[#allocation5 + $0x1e0] sm:$0xff]  ;;  %v98_v17 = vld [vmem:[#allocation5 + $0x1d8] sm:$0xff]  ;;  %v65_v20 = vld [vmem:[#allocation5 + $0xd0] sm:$0xff]  ;;  %v114_v0 = vsub.s32 2, %v105_v47 }
  0x20   :  { %319 = vmatpush3.msra.mxu1 %v85_v7  ;;  %285 = vmatprep.subr.mxu0 %v68_v8  ;;  %v51_v14 = vld [vmem:[#allocation5 + $0x60] sm:$0xff]  ;;  %v50_v18 = vld [vmem:[#allocation5 + $0x58] sm:$0xff]  ;;  %v97_v21 = vld [vmem:[#allocation5 + $0x1d0] sm:$0xff]  ;;  %p403_p13 = por %p402_p12, %p401_p11 }
  0x21   :  { %320 = vmatprep.subr.mxu1 %v100_v9  ;;  %v83_v15 = vld [vmem:[#allocation5 + $0x160] sm:$0xff]  ;;  %286 = vmatpush3.msra.mxu0 %v52_v10  ;;  %v82_v19 = vld [vmem:[#allocation5 + $0x158] sm:$0xff]  ;;  %v49_v22 = vld [vmem:[#allocation5 + $0x50] sm:$0xff] }
  0x22   :  { %321 = vmatpush3.msra.mxu1 %v84_v11  ;;  %287 = vmatprep.subr.mxu0 %v67_v12  ;;  %v81_v23 = vld [vmem:[#allocation5 + $0x150] sm:$0xff]  ;;  %v64_v24 = vld [vmem:[#allocation5 + $0xc8] sm:$0xff]  ;;  %v63_v28 = vld [vmem:[#allocation5 + $0xc0] sm:$0xff]  ;;  %p404_p0 = pnand %p403_p13, %p397_p10 }
  0x23   :  { %322 = vmatprep.subr.mxu1 %v99_v13  ;;  %288 = vmatpush3.msra.mxu0 %v51_v14  ;;  %v96_v25 = vld [vmem:[#allocation5 + $0x1c8] sm:$0xff]  ;;  %v95_v29 = vld [vmem:[#allocation5 + $0x1c0] sm:$0xff]  ;;  %v62_v32 = vld [vmem:[#allocation5 + $0xb8] sm:$0xff] }
  0x24   :  { %323 = vmatpush3.msra.mxu1 %v83_v15  ;;  %289 = vmatprep.subr.mxu0 %v66_v16  ;;  %v48_v26 = vld [vmem:[#allocation5 + $0x48] sm:$0xff]  ;;  %v47_v30 = vld [vmem:[#allocation5 + $0x40] sm:$0xff]  ;;  %v94_v33 = vld [vmem:[#allocation5 + $0x1b8] sm:$0xff] }
  0x25   :  { %324 = vmatprep.subr.mxu1 %v98_v17  ;;  %290 = vmatpush3.msra.mxu0 %v50_v18  ;;  %v80_v27 = vld [vmem:[#allocation5 + $0x148] sm:$0xff]  ;;  %v79_v31 = vld [vmem:[#allocation5 + $0x140] sm:$0xff]  ;;  %v46_v34 = vld [vmem:[#allocation5 + $0x38] sm:$0xff] }
  0x26   :  { %325 = vmatpush3.msra.mxu1 %v82_v19  ;;  %291 = vmatprep.subr.mxu0 %v65_v20  ;;  %v78_v35 = vld [vmem:[#allocation5 + $0x138] sm:$0xff]  ;;  %v61_v36 = vld [vmem:[#allocation5 + $0xb0] sm:$0xff]  ;;  %v60_v41 = vld [vmem:[#allocation5 + $0xa8] sm:$0xff] }
  0x27   :  { %326 = vmatprep.subr.mxu1 %v97_v21  ;;  %292 = vmatpush3.msra.mxu0 %v49_v22  ;;  %v93_v37 = vld [vmem:[#allocation5 + $0x1b0] sm:$0xff]  ;;  %v92_v42 = vld [vmem:[#allocation5 + $0x1a8] sm:$0xff]  ;;  %v59_v45 = vld [vmem:[#allocation5 + $0xa0] sm:$0xff] }
  0x28   :  { %327 = vmatpush3.msra.mxu1 %v81_v23  ;;  %293 = vmatprep.subr.mxu0 %v64_v24  ;;  %v45_v39 = vld [vmem:[#allocation5 + $0x30] sm:$0xff]  ;;  %v44_v43 = vld [vmem:[#allocation5 + $0x28] sm:$0xff]  ;;  %v91_v46 = vld [vmem:[#allocation5 + $0x1a0] sm:$0xff] }
  0x29   :  { %328 = vmatprep.subr.mxu1 %v96_v25  ;;  %294 = vmatpush3.msra.mxu0 %v48_v26  ;;  %v77_v40 = vld [vmem:[#allocation5 + $0x130] sm:$0xff]  ;;  %v76_v44 = vld [vmem:[#allocation5 + $0x128] sm:$0xff]  ;;  %v43_v48 = vld [vmem:[#allocation5 + $0x20] sm:$0xff] }
  0x2a   :  { %329 = vmatpush3.msra.mxu1 %v80_v27  ;;  %295 = vmatprep.subr.mxu0 %v63_v28  ;;  %v75_v49 = vld [vmem:[#allocation5 + $0x120] sm:$0xff]  ;;  %v58_v50 = vld [vmem:[#allocation5 + $0x98] sm:$0xff]  ;;  %v57_v54 = vld [vmem:[#allocation5 + $0x90] sm:$0xff] }
  0x2b   :  { %330 = vmatprep.subr.mxu1 %v95_v29  ;;  %296 = vmatpush3.msra.mxu0 %v47_v30  ;;  %v90_v51 = vld [vmem:[#allocation5 + $0x198] sm:$0xff]  ;;  %v89_v55 = vld [vmem:[#allocation5 + $0x190] sm:$0xff]  ;;  %v56_v61 = vld [vmem:[#allocation5 + $0x88] sm:$0xff] }
  0x2c   :  { %331 = vmatpush3.msra.mxu1 %v79_v31  ;;  %297 = vmatprep.subr.mxu0 %v62_v32  ;;  %v42_v52 = vld [vmem:[#allocation5 + $0x18] sm:$0xff]  ;;  %v41_v57 = vld [vmem:[#allocation5 + $0x10] sm:$0xff]  ;;  %v88_v62 = vld [vmem:[#allocation5 + $0x188] sm:$0xff] }
  0x2d   :  { %332 = vmatprep.subr.mxu1 %v94_v33  ;;  %298 = vmatpush3.msra.mxu0 %v46_v34  ;;  %v74_v53 = vld [vmem:[#allocation5 + $0x118] sm:$0xff]  ;;  %v73_v58 = vld [vmem:[#allocation5 + $0x110] sm:$0xff]  ;;  %v40_v1 = vld [vmem:[#allocation5 + $0x8] sm:$0xff] }
  0x2e   :  { %333 = vmatpush3.msra.mxu1 %v78_v35  ;;  %299 = vmatprep.subr.mxu0 %v61_v36  ;;  %v38_v59 = vld [vmem:[#allocation2] sm:$0xf]  ;;  %v72_v2 = vld [vmem:[#allocation5 + $0x108] sm:$0xff]  ;;  %v55_v3 = vld [vmem:[#allocation5 + $0x80] sm:$0xff] }
  0x2f   :  { %334 = vmatprep.subr.mxu1 %v93_v37  ;;  %300 = vmatpush3.msra.mxu0 %v45_v39  ;;  %v87_v4 = vld [vmem:[#allocation5 + $0x180] sm:$0xff]  ;;  %v111_v5 = vrot.slane %v38_v59, %v110_v56  ;;  %v119_v7 = vrot.slane %v38_v59, %v118_v60  ;;  %v107_v9 = vrot.slane %v38_v59, %v106_v63 }
  0x30   :  { %335 = vmatpush3.msra.mxu1 %v77_v40  ;;  %301 = vmatprep.subr.mxu0 %v60_v41  ;;  %v39_v6 = vld [vmem:[#allocation5] sm:$0xff]  ;;  %v115_v10 = vrot.slane %v38_v59, %v114_v0 }
  0x31   :  { %336 = vmatprep.subr.mxu1 %v92_v42  ;;  %302 = vmatpush3.msra.mxu0 %v44_v43  ;;  %v71_v8 = vld [vmem:[#allocation5 + $0x100] sm:$0xff] }
  0x32   :  { %337 = vmatpush3.msra.mxu1 %v76_v44  ;;  %303 = vmatprep.subr.mxu0 %v59_v45 }
  0x33   :  { %338 = vmatprep.subr.mxu1 %v91_v46  ;;  %304 = vmatpush3.msra.mxu0 %v43_v48 }
  0x34   :  { %339 = vmatpush3.msra.mxu1 %v75_v49  ;;  %305 = vmatprep.subr.mxu0 %v58_v50 }
  0x35   :  { %340 = vmatprep.subr.mxu1 %v90_v51  ;;  %306 = vmatpush3.msra.mxu0 %v42_v52 }
  0x36   :  { %341 = vmatpush3.msra.mxu1 %v74_v53  ;;  %307 = vmatprep.subr.mxu0 %v57_v54 }
  0x37   :  { %342 = vmatprep.subr.mxu1 %v89_v55  ;;  %308 = vmatpush3.msra.mxu0 %v41_v57 }
  0x38   :  { %343 = vmatpush3.msra.mxu1 %v73_v58  ;;  %309 = vmatprep.subr.mxu0 %v56_v61 }
  0x39   :  { %344 = vmatprep.subr.mxu1 %v88_v62  ;;  %310 = vmatpush3.msra.mxu0 %v40_v1 }
  0x3a   :  { %345 = vmatpush3.msra.mxu1 %v72_v2  ;;  %311 = vmatprep.subr.mxu0 %v55_v3 }
  0x3b   :  { %346 = vmatprep.subr.mxu1 %v87_v4  ;;  %312 = vmatpush3.msra.mxu0 %v39_v6 }
  0x3c   :  { %188 = vmatprep.mubr.f32.mxu0 %v111_v5  ;;  %347 = vmatpush3.msra.mxu1 %v71_v8 }
  0x3d   :  { %258 = vmatprep.mubr.f32.mxu1 %v119_v7  ;;  %189 = vmatmul.mubr.f32.vlgmr.msra.gmra.mxu0 %v107_v9 }
  0x3e   :  { %259 = vmatmul.mubr.f32.vlgmr.msra.gmra.mxu1 %v115_v10 }
  0xfd   :  { %v313_v11 = vpop.f32.mrf.mxu0 }
  0xfe   :  { %v348_v12 = vpop.f32.mrf.mxu1 }
  0xff   :  { %v314_v13 = vpop.f32.mrf.mxu0 }
 0x100   :  { %v349_v14 = vpop.f32.mrf.mxu1  ;;  %v315_v15 = vadd.f32 %v314_v13, %v313_v11 }
 0x101   :  { %v350_v16 = vadd.f32 %v349_v14, %v348_v12 }
 0x103   :  { %v261_v17 = vadd.f32 %v350_v16, %v315_v15 }
 0x105   :  { %264 = vst [vmem:[#allocation7] sm:$0x1] %v261_v17 }
 0x106   :  { %407 = shalt.err (!%p404_p0)
}
 0x107   :  { %274 = dma.vmem_to_hbm [thread:$0]  %s272_s1, 16, %s453_s2, [#allocation4]  }
 0x108   :  { %420 = dma.done.wait [#allocation4], 16  }
 0x109   :  { %421 = vsyncadd [#allocation4], 4294967280 }
 0x10a   :  { %278 = vsyncpa [#allocation3], 1 }
 0x10b   :  { %279 = vsyncpa [#allocation6], 1 }
 0x10c   :  { %280 = vsyncpa [#allocation4], 1 }

</bundles_post_ra>
